<compile_context>
chip_gen: v6e
topology: v6e:2x2x1
jax: 0.10.0
libtpu: 0.0.40
codegen_flags: <defaults>
</compile_context>

<pallas_src>
import functools

import jax
import jax.numpy as jnp
from jax.experimental import pallas as pl
from jax.experimental.pallas import tpu as pltpu

VMEM = pltpu.MemorySpace.VMEM
SMEM = pltpu.MemorySpace.SMEM
TAU = 0.05


def _vspec():
    return pl.BlockSpec(memory_space=VMEM)


# ----------------------------- Pallas kernels ------------------------------ #

def _durendal_layer_kernel(snap_ref, x_ref, a_ref, cw_ref, cb_ref,
                           pw_ref, pb_ref, aw_ref, ab_ref, aq_ref,
                           past_u_ref, past_i_ref,
                           agg_u_ref, agg_i_ref, cur_u_ref, cur_i_ref,
                           *, n_rel, hidden, tau):
    f32 = jnp.float32
    bf16 = jnp.bfloat16
    n_item = a_ref.shape[1]
    n_user = x_ref.shape[0]

    x = x_ref[...].astype(bf16)                                   # [NU, Cin]

    # Relation-invariant user path: projuserK(x_user), computed once.
    user_out = (jnp.dot(x, pw_ref[...], preferred_element_type=f32)
                + pb_ref[...])                                    # [NU, H]

    # DurendalConv, project-first: A_r @ (X @ W_r) + b_r, with per-relation
    # weights concatenated along lanes so one matmul covers all relations.
    xw = jnp.dot(x, cw_ref[...], preferred_element_type=f32)      # [NU, R*H]
    xw_bf = xw.astype(bf16)
    item_cols = []
    for r in range(n_rel):
        sl = slice(r * hidden, (r + 1) * hidden)
        item_cols.append(
            jnp.dot(a_ref[r], xw_bf[:, sl], preferred_element_type=f32)
            + cb_ref[:, sl])
    item_out = jnp.concatenate(item_cols, axis=1)                 # [NI, R*H]
    user_cat = jnp.concatenate([user_out] * n_rel, axis=1)        # [NU, R*H]

    # SemanticUpdateWA EMA epilogue (no-op when snap == 0).
    t = jnp.where(snap_ref[0] > 0, tau, 0.0)
    cur_u = t * past_u_ref[...] + (1.0 - t) * user_cat
    cur_i = t * past_i_ref[...] + (1.0 - t) * item_out
    cur_u_ref[...] = cur_u
    cur_i_ref[...] = cur_i

    # SemanticAttention: flatten all (relation, node-type) blocks into a single
    # MXU matmul, then score with a VPU mul + lane reduce (no width-1 matvec).
    z_blocks = ([cur_i[:, r * hidden:(r + 1) * hidden] for r in range(n_rel)]
                + [cur_u[:, r * hidden:(r + 1) * hidden] for r in range(n_rel)])
    z_flat = jnp.concatenate(z_blocks, axis=0)                    # [R*(NI+NU), H]
    proj = jnp.tanh(jnp.dot(z_flat.astype(bf16), aw_ref[...],
                            preferred_element_type=f32) + ab_ref[...])
    s = jnp.sum(proj * aq_ref[...], axis=-1, keepdims=True)       # [R*(NI+NU), 1]

    def rel_scores(offset, count):
        return [jnp.sum(s[offset + r * count: offset + (r + 1) * count, :],
                        keepdims=True) / count for r in range(n_rel)]

    def softmax_over_rels(sc):                                    # list of [1,1]
        m = sc[0]
        for v in sc[1:]:
            m = jnp.maximum(m, v)
        es = [jnp.exp(v - m) for v in sc]
        tot = es[0]
        for v in es[1:]:
            tot = tot + v
        return [v / tot for v in es]

    beta_i = softmax_over_rels(rel_scores(0, n_item))
    beta_u = softmax_over_rels(rel_scores(n_rel * n_item, n_user))

    agg_i = beta_i[0] * cur_i[:, 0:hidden]
    agg_u = beta_u[0] * cur_u[:, 0:hidden]
    for r in range(1, n_rel):
        sl = slice(r * hidden, (r + 1) * hidden)
        agg_i = agg_i + beta_i[r] * cur_i[:, sl]
        agg_u = agg_u + beta_u[r] * cur_u[:, sl]
    agg_i_ref[...] = agg_i
    agg_u_ref[...] = agg_u


def durendal_layer(snap, x_user, a_stack, conv_w, conv_b, proj_w, proj_b,
                   agg_w, agg_b, agg_q, past_u, past_i, *, n_rel, hidden):
    n_user = x_user.shape[0]
    n_item = a_stack.shape[1]
    kernel = functools.partial(_durendal_layer_kernel, n_rel=n_rel,
                               hidden=hidden, tau=TAU)
    out_shapes = (
        jax.ShapeDtypeStruct((n_user, hidden), jnp.float32),           # agg_user
        jax.ShapeDtypeStruct((n_item, hidden), jnp.float32),           # agg_item
        jax.ShapeDtypeStruct((n_user, n_rel * hidden), jnp.float32),   # cur_user
        jax.ShapeDtypeStruct((n_item, n_rel * hidden), jnp.float32),   # cur_item
    )
    in_specs = ([pl.BlockSpec(memory_space=SMEM)]
                + [_vspec() for _ in range(11)])
    return pl.pallas_call(
        kernel,
        out_shape=out_shapes,
        in_specs=in_specs,
        out_specs=tuple(_vspec() for _ in range(4)),
    )(snap, x_user, a_stack, conv_w, conv_b, proj_w, proj_b,
      agg_w, agg_b, agg_q, past_u, past_i)


def _edge_score_kernel(u_ref, i_ref, src_ref, dst_ref, w_ref, b_ref, o_ref):
    f32 = jnp.float32
    e = src_ref.shape[0]
    n_user = u_ref.shape[0]
    n_item = i_ref.shape[0]
    # Fused gather via one-hot selection matmuls (indices live in VMEM).
    sel_u = (jax.lax.broadcasted_iota(jnp.int32, (e, n_user), 1)
             == src_ref[...]).astype(f32)
    sel_i = (jax.lax.broadcasted_iota(jnp.int32, (e, n_item), 1)
             == dst_ref[...]).astype(f32)
    h_src = jnp.dot(sel_u, u_ref[...], preferred_element_type=f32)
    h_dst = jnp.dot(sel_i, i_ref[...], preferred_element_type=f32)
    had = h_src * h_dst
    # post Linear(h2, 2) + sum(dim=-1) folded: rowsum(had * post_w.sum(1)) + post_b.sum()
    o_ref[...] = jnp.sum(had * w_ref[...], axis=-1, keepdims=True) + b_ref[...]


def edge_score(agg_user, agg_item, src_idx, dst_idx, w_sum, b_sum):
    e = src_idx.shape[0]
    return pl.pallas_call(
        _edge_score_kernel,
        out_shape=jax.ShapeDtypeStruct((e, 1), jnp.float32),
        in_specs=[_vspec() for _ in range(6)],
        out_specs=_vspec(),
    )(agg_user, agg_item, src_idx, dst_idx, w_sum, b_sum)


# ------------------------------- JAX glue ---------------------------------- #

def build_adj_mean(src, dst, n_dst, n_src):
    a = jnp.zeros((n_dst, n_src), jnp.float32).at[dst, src].add(1.0)
    deg = jnp.sum(a, axis=1, keepdims=True)
    return a / jnp.maximum(deg, 1.0)


def init_params(key, cin_user, h1, h2, rels):
    n_rel = len(rels)
    ks = iter(jax.random.split(key, 16))

    def w(shape):
        return 0.1 * jax.random.normal(next(ks), shape, jnp.float32)

    post_w = w((h2, 2))
    post_b = jnp.zeros((2,), jnp.float32)
    return {
        # per-relation conv weights concatenated along output lanes (lane-dense)
        "conv1_w": w((cin_user, n_rel * h1)).astype(jnp.bfloat16),
        "conv1_b": jnp.zeros((1, n_rel * h1), jnp.float32),
        "projuser1_w": w((cin_user, h1)).astype(jnp.bfloat16),
        "projuser1_b": jnp.zeros((1, h1), jnp.float32),
        "agg1_w": w((h1, h1)).astype(jnp.bfloat16),
        "agg1_b": jnp.zeros((1, h1), jnp.float32),
        "agg1_q": w((1, h1)),
        "conv2_w": w((h1, n_rel * h2)).astype(jnp.bfloat16),
        "conv2_b": jnp.zeros((1, n_rel * h2), jnp.float32),
        "projuser2_w": w((h1, h2)).astype(jnp.bfloat16),
        "projuser2_b": jnp.zeros((1, h2), jnp.float32),
        "agg2_w": w((h2, h2)).astype(jnp.bfloat16),
        "agg2_b": jnp.zeros((1, h2), jnp.float32),
        "agg2_q": w((1, h2)),
        # post Linear(h2,2)+sum(-1) folded into a single dot
        "post_w_sum": post_w.sum(axis=1).reshape(1, h2),
        "post_b_sum": post_b.sum().reshape(1, 1),
    }


def forward(params, x_user, x_item, a_stack, edge_label_index, snap,
            past1=None, past2=None, *, rels):
    del x_item  # no item->user relations in the metadata; raw item feats unused
    n_rel = len(rels)
    h1 = params["projuser1_b"].shape[-1]
    h2 = params["projuser2_b"].shape[-1]
    nu = x_user.shape[0]
    ni = a_stack.shape[1]
    snap_arr = jnp.asarray([snap], jnp.int32)

    def cat_past(past, h):
        if past is None:
            return (jnp.zeros((nu, n_rel * h), jnp.float32),
                    jnp.zeros((ni, n_rel * h), jnp.float32))
        return (jnp.concatenate([past["user"][r] for r in rels], axis=1),
                jnp.concatenate([past["item"][r] for r in rels], axis=1))

    def split_cur(cur_u, cur_i, h):
        return {"user": {r: cur_u[:, k * h:(k + 1) * h]
                         for k, r in enumerate(rels)},
                "item": {r: cur_i[:, k * h:(k + 1) * h]
                         for k, r in enumerate(rels)}}

    # ---- layer 1 (conv1 + projuser1 + update1 + agg1, one fused kernel) ----
    pu1, pi1 = cat_past(past1, h1)
    agg1_u, agg1_i, cur1_u, cur1_i = durendal_layer(
        snap_arr, x_user, a_stack,
        params["conv1_w"], params["conv1_b"],
        params["projuser1_w"], params["projuser1_b"],
        params["agg1_w"], params["agg1_b"], params["agg1_q"],
        pu1, pi1, n_rel=n_rel, hidden=h1)
    del agg1_i  # item aggregate of layer 1 is not consumed by layer 2 (user->item only)

    # ---- layer 2 (conv2 + projuser2 + update2 + agg2, one fused kernel) ----
    pu2, pi2 = cat_past(past2, h2)
    agg2_u, agg2_i, cur2_u, cur2_i = durendal_layer(
        snap_arr, agg1_u, a_stack,
        params["conv2_w"], params["conv2_b"],
        params["projuser2_w"], params["projuser2_b"],
        params["agg2_w"], params["agg2_b"], params["agg2_q"],
        pu2, pi2, n_rel=n_rel, hidden=h2)

    # ---- link prediction head (gather + hadamard + post + sum, one kernel) ----
    src = edge_label_index[0].reshape(-1, 1).astype(jnp.int32)
    dst = edge_label_index[1].reshape(-1, 1).astype(jnp.int32)
    h = edge_score(agg2_u, agg2_i, src, dst,
                   params["post_w_sum"], params["post_b_sum"])[:, 0]

    return h, split_cur(cur1_u, cur1_i, h1), split_cur(cur2_u, cur2_i, h2)


# --------------------------------- main ------------------------------------ #

if __name__ == "__main__":
    key = jax.random.PRNGKey(0)
    keys = iter(jax.random.split(key, 16))

    NU, NI = 8, 16           # users / items
    CIN_U, CIN_I = 16, 24    # raw feature dims
    H1, H2 = 32, 16          # hidden_conv_1 / hidden_conv_2
    E, EL = 24, 8            # edges per relation / label edges
    RELS = ("click", "buy")  # user -> item relations

    x_user = jax.random.normal(next(keys), (NU, CIN_U), jnp.float32)
    x_item = jax.random.normal(next(keys), (NI, CIN_I), jnp.float32)

    adjs = []
    for r in RELS:
        src = jax.random.randint(next(keys), (E,), 0, NU)
        dst = jax.random.randint(next(keys), (E,), 0, NI)
        adjs.append(build_adj_mean(src, dst, NI, NU))
    a_stack = jnp.stack(adjs, axis=0).astype(jnp.bfloat16)   # [R, NI, NU]

    eli_u = jax.random.randint(next(keys), (EL,), 0, NU)
    eli_i = jax.random.randint(next(keys), (EL,), 0, NI)
    edge_label_index = jnp.stack([eli_u, eli_i])

    params = init_params(next(keys), CIN_U, H1, H2, RELS)

    fwd = functools.partial(forward, rels=RELS)
    # snap 0: no temporal state; snap 1: EMA update against snap-0 embeddings.
    h0, cur1, cur2 = fwd(params, x_user, x_item, a_stack, edge_label_index,
                         snap=0)
    h1_, _, _ = fwd(params, x_user, x_item, a_stack, edge_label_index,
                    snap=1, past1=cur1, past2=cur2)

    jax.block_until_ready(h1_)
    assert h0.shape == (EL,) and h1_.shape == (EL,)
    print("KERNEL_OK")
</pallas_src>

<mosaic_0001>
module attributes {stable_mosaic.version = 11 : i64} {
  func.func @_durendal_layer_kernel(%arg0: memref<1xi32, #tpu.memory_space<smem>>, %arg1: memref<8x16xf32, #tpu.memory_space<vmem>>, %arg2: memref<2x16x8xbf16, #tpu.memory_space<vmem>>, %arg3: memref<16x64xbf16, #tpu.memory_space<vmem>>, %arg4: memref<1x64xf32, #tpu.memory_space<vmem>>, %arg5: memref<16x32xbf16, #tpu.memory_space<vmem>>, %arg6: memref<1x32xf32, #tpu.memory_space<vmem>>, %arg7: memref<32x32xbf16, #tpu.memory_space<vmem>>, %arg8: memref<1x32xf32, #tpu.memory_space<vmem>>, %arg9: memref<1x32xf32, #tpu.memory_space<vmem>>, %arg10: memref<8x64xf32, #tpu.memory_space<vmem>>, %arg11: memref<16x64xf32, #tpu.memory_space<vmem>>, %arg12: memref<8x32xf32, #tpu.memory_space<vmem>>, %arg13: memref<16x32xf32, #tpu.memory_space<vmem>>, %arg14: memref<8x64xf32, #tpu.memory_space<vmem>>, %arg15: memref<16x64xf32, #tpu.memory_space<vmem>>) attributes {dimension_semantics = [], scalar_prefetch = 0 : i64, scratch_operands = 0 : i64, tpu.core_type = #tpu.core_type<tc>} {
    %c0 = arith.constant 0 : index
    %c0_0 = arith.constant 0 : index
    %0 = vector.load %arg1[%c0, %c0_0] : memref<8x16xf32, #tpu.memory_space<vmem>>, vector<8x16xf32>
    %1 = arith.truncf %0 : vector<8x16xf32> to vector<8x16xbf16>
    %c0_1 = arith.constant 0 : index
    %c0_2 = arith.constant 0 : index
    %2 = vector.load %arg5[%c0_1, %c0_2] : memref<16x32xbf16, #tpu.memory_space<vmem>>, vector<16x32xbf16>
    %cst = arith.constant dense<0.000000e+00> : vector<8x32xf32>
    %3 = tpu.matmul %1, %2, %cst {dimension_numbers = #tpu.dot_dimension_numbers<[1], [0], [0], [1], [0, 0, 1, 1], [], []>} : vector<8x16xbf16>, vector<16x32xbf16>, vector<8x32xf32> -> vector<8x32xf32>
    %c0_3 = arith.constant 0 : index
    %c0_4 = arith.constant 0 : index
    %4 = vector.load %arg6[%c0_3, %c0_4] : memref<1x32xf32, #tpu.memory_space<vmem>>, vector<1x32xf32>
    %5 = vector.broadcast %4 : vector<1x32xf32> to vector<8x32xf32>
    %6 = arith.addf %3, %5 : vector<8x32xf32>
    %c0_5 = arith.constant 0 : index
    %c0_6 = arith.constant 0 : index
    %7 = vector.load %arg3[%c0_5, %c0_6] : memref<16x64xbf16, #tpu.memory_space<vmem>>, vector<16x64xbf16>
    %cst_7 = arith.constant dense<0.000000e+00> : vector<8x64xf32>
    %8 = tpu.matmul %1, %7, %cst_7 {dimension_numbers = #tpu.dot_dimension_numbers<[1], [0], [0], [1], [0, 0, 1, 1], [], []>} : vector<8x16xbf16>, vector<16x64xbf16>, vector<8x64xf32> -> vector<8x64xf32>
    %9 = arith.truncf %8 : vector<8x64xf32> to vector<8x64xbf16>
    %c0_8 = arith.constant 0 : index
    %c0_9 = arith.constant 0 : index
    %c0_10 = arith.constant 0 : index
    %10 = vector.load %arg2[%c0_8, %c0_9, %c0_10] : memref<2x16x8xbf16, #tpu.memory_space<vmem>>, vector<1x16x8xbf16>
    %11 = vector.shape_cast %10 : vector<1x16x8xbf16> to vector<16x8xbf16>
    %12 = vector.extract_strided_slice %9 {offsets = [0, 0], sizes = [8, 32], strides = [1, 1]} : vector<8x64xbf16> to vector<8x32xbf16>
    %cst_11 = arith.constant dense<0.000000e+00> : vector<16x32xf32>
    %13 = tpu.matmul %11, %12, %cst_11 {dimension_numbers = #tpu.dot_dimension_numbers<[1], [0], [0], [1], [0, 0, 1, 1], [], []>} : vector<16x8xbf16>, vector<8x32xbf16>, vector<16x32xf32> -> vector<16x32xf32>
    %c0_12 = arith.constant 0 : index
    %c0_13 = arith.constant 0 : index
    %14 = vector.load %arg4[%c0_12, %c0_13] : memref<1x64xf32, #tpu.memory_space<vmem>>, vector<1x32xf32>
    %15 = vector.broadcast %14 : vector<1x32xf32> to vector<16x32xf32>
    %16 = arith.addf %13, %15 : vector<16x32xf32>
    %c1 = arith.constant 1 : index
    %c0_14 = arith.constant 0 : index
    %c0_15 = arith.constant 0 : index
    %17 = vector.load %arg2[%c1, %c0_14, %c0_15] : memref<2x16x8xbf16, #tpu.memory_space<vmem>>, vector<1x16x8xbf16>
    %18 = vector.shape_cast %17 : vector<1x16x8xbf16> to vector<16x8xbf16>
    %19 = vector.extract_strided_slice %9 {offsets = [0, 32], sizes = [8, 32], strides = [1, 1]} : vector<8x64xbf16> to vector<8x32xbf16>
    %cst_16 = arith.constant dense<0.000000e+00> : vector<16x32xf32>
    %20 = tpu.matmul %18, %19, %cst_16 {dimension_numbers = #tpu.dot_dimension_numbers<[1], [0], [0], [1], [0, 0, 1, 1], [], []>} : vector<16x8xbf16>, vector<8x32xbf16>, vector<16x32xf32> -> vector<16x32xf32>
    %c0_17 = arith.constant 0 : index
    %c32 = arith.constant 32 : index
    %21 = vector.load %arg4[%c0_17, %c32] : memref<1x64xf32, #tpu.memory_space<vmem>>, vector<1x32xf32>
    %22 = vector.broadcast %21 : vector<1x32xf32> to vector<16x32xf32>
    %23 = arith.addf %20, %22 : vector<16x32xf32>
    %24 = tpu.concatenate %16, %23 in 1 : vector<16x32xf32>, vector<16x32xf32> -> vector<16x64xf32>
    %25 = tpu.concatenate %6, %6 in 1 : vector<8x32xf32>, vector<8x32xf32> -> vector<8x64xf32>
    %c0_18 = arith.constant 0 : index
    %26 = memref.load %arg0[%c0_18] : memref<1xi32, #tpu.memory_space<smem>>
    %c0_i32 = arith.constant 0 : i32
    %27 = arith.cmpi sgt, %26, %c0_i32 : i32
    %cst_19 = arith.constant 5.000000e-02 : f32
    %cst_20 = arith.constant 0.000000e+00 : f32
    %28 = arith.select %27, %cst_19, %cst_20 : f32
    %c0_21 = arith.constant 0 : index
    %c0_22 = arith.constant 0 : index
    %29 = vector.load %arg10[%c0_21, %c0_22] : memref<8x64xf32, #tpu.memory_space<vmem>>, vector<8x64xf32>
    %30 = vector.broadcast %28 : f32 to vector<8x64xf32>
    %31 = arith.mulf %30, %29 : vector<8x64xf32>
    %cst_23 = arith.constant 1.000000e+00 : f32
    %32 = arith.subf %cst_23, %28 : f32
    %33 = vector.broadcast %32 : f32 to vector<8x64xf32>
    %34 = arith.mulf %33, %25 : vector<8x64xf32>
    %35 = arith.addf %31, %34 : vector<8x64xf32>
    %c0_24 = arith.constant 0 : index
    %c0_25 = arith.constant 0 : index
    %36 = vector.load %arg11[%c0_24, %c0_25] : memref<16x64xf32, #tpu.memory_space<vmem>>, vector<16x64xf32>
    %37 = vector.broadcast %28 : f32 to vector<16x64xf32>
    %38 = arith.mulf %37, %36 : vector<16x64xf32>
    %cst_26 = arith.constant 1.000000e+00 : f32
    %39 = arith.subf %cst_26, %28 : f32
    %40 = vector.broadcast %39 : f32 to vector<16x64xf32>
    %41 = arith.mulf %40, %24 : vector<16x64xf32>
    %42 = arith.addf %38, %41 : vector<16x64xf32>
    %c0_27 = arith.constant 0 : index
    %c0_28 = arith.constant 0 : index
    %43 = vector.load %arg14[%c0_27, %c0_28] : memref<8x64xf32, #tpu.memory_space<vmem>>, vector<8x64xf32>
    tpu.vector_store %arg14[%c0_27, %c0_28], %35 {strides = array<i32>} : memref<8x64xf32, #tpu.memory_space<vmem>>, vector<8x64xf32>,
    %c0_29 = arith.constant 0 : index
    %c0_30 = arith.constant 0 : index
    %44 = vector.load %arg15[%c0_29, %c0_30] : memref<16x64xf32, #tpu.memory_space<vmem>>, vector<16x64xf32>
    tpu.vector_store %arg15[%c0_29, %c0_30], %42 {strides = array<i32>} : memref<16x64xf32, #tpu.memory_space<vmem>>, vector<16x64xf32>,
    %45 = vector.extract_strided_slice %42 {offsets = [0, 0], sizes = [16, 32], strides = [1, 1]} : vector<16x64xf32> to vector<16x32xf32>
    %46 = vector.extract_strided_slice %42 {offsets = [0, 32], sizes = [16, 32], strides = [1, 1]} : vector<16x64xf32> to vector<16x32xf32>
    %47 = vector.extract_strided_slice %35 {offsets = [0, 0], sizes = [8, 32], strides = [1, 1]} : vector<8x64xf32> to vector<8x32xf32>
    %48 = vector.extract_strided_slice %35 {offsets = [0, 32], sizes = [8, 32], strides = [1, 1]} : vector<8x64xf32> to vector<8x32xf32>
    %49 = tpu.concatenate %45, %46, %47, %48 in 0 : vector<16x32xf32>, vector<16x32xf32>, vector<8x32xf32>, vector<8x32xf32> -> vector<48x32xf32>
    %50 = arith.truncf %49 : vector<48x32xf32> to vector<48x32xbf16>
    %c0_31 = arith.constant 0 : index
    %c0_32 = arith.constant 0 : index
    %51 = vector.load %arg7[%c0_31, %c0_32] : memref<32x32xbf16, #tpu.memory_space<vmem>>, vector<32x32xbf16>
    %cst_33 = arith.constant dense<0.000000e+00> : vector<48x32xf32>
    %52 = tpu.matmul %50, %51, %cst_33 {dimension_numbers = #tpu.dot_dimension_numbers<[1], [0], [0], [1], [0, 0, 1, 1], [], []>} : vector<48x32xbf16>, vector<32x32xbf16>, vector<48x32xf32> -> vector<48x32xf32>
    %c0_34 = arith.constant 0 : index
    %c0_35 = arith.constant 0 : index
    %53 = vector.load %arg8[%c0_34, %c0_35] : memref<1x32xf32, #tpu.memory_space<vmem>>, vector<1x32xf32>
    %54 = vector.broadcast %53 : vector<1x32xf32> to vector<48x32xf32>
    %55 = arith.addf %52, %54 : vector<48x32xf32>
    %56 = math.tanh %55 : vector<48x32xf32>
    %c0_36 = arith.constant 0 : index
    %c0_37 = arith.constant 0 : index
    %57 = vector.load %arg9[%c0_36, %c0_37] : memref<1x32xf32, #tpu.memory_space<vmem>>, vector<1x32xf32>
    %58 = vector.broadcast %57 : vector<1x32xf32> to vector<48x32xf32>
    %59 = arith.mulf %56, %58 : vector<48x32xf32>
    %cst_38 = arith.constant dense<0.000000e+00> : vector<48xf32>
    %60 = vector.multi_reduction <add>, %59, %cst_38 [1] : vector<48x32xf32> to vector<48xf32>
    %61 = vector.shape_cast %60 : vector<48xf32> to vector<48x1xf32>
    %62 = vector.extract_strided_slice %61 {offsets = [0, 0], sizes = [16, 1], strides = [1, 1]} : vector<48x1xf32> to vector<16x1xf32>
    %63 = vector.shape_cast %62 : vector<16x1xf32> to vector<1x16x1xf32>
    %cst_39 = arith.constant dense<0.000000e+00> : vector<1xf32>
    %64 = vector.multi_reduction <add>, %63, %cst_39 [1, 2] : vector<1x16x1xf32> to vector<1xf32>
    %65 = vector.shape_cast %64 : vector<1xf32> to vector<1x1x1xf32>
    %66 = vector.extract %65[0, 0, 0] : f32 from vector<1x1x1xf32>
    %67 = vector.broadcast %66 : f32 to vector<1x1xf32>
    %cst_40 = arith.constant 1.600000e+01 : f32
    %68 = vector.broadcast %cst_40 : f32 to vector<1x1xf32>
    %69 = arith.divf %67, %68 : vector<1x1xf32>
    %70 = vector.extract_strided_slice %61 {offsets = [16, 0], sizes = [16, 1], strides = [1, 1]} : vector<48x1xf32> to vector<16x1xf32>
    %71 = vector.shape_cast %70 : vector<16x1xf32> to vector<1x16x1xf32>
    %cst_41 = arith.constant dense<0.000000e+00> : vector<1xf32>
    %72 = vector.multi_reduction <add>, %71, %cst_41 [1, 2] : vector<1x16x1xf32> to vector<1xf32>
    %73 = vector.shape_cast %72 : vector<1xf32> to vector<1x1x1xf32>
    %74 = vector.extract %73[0, 0, 0] : f32 from vector<1x1x1xf32>
    %75 = vector.broadcast %74 : f32 to vector<1x1xf32>
    %cst_42 = arith.constant 1.600000e+01 : f32
    %76 = vector.broadcast %cst_42 : f32 to vector<1x1xf32>
    %77 = arith.divf %75, %76 : vector<1x1xf32>
    %78 = arith.maximumf %69, %77 : vector<1x1xf32>
    %79 = arith.subf %69, %78 : vector<1x1xf32>
    %80 = math.exp %79 : vector<1x1xf32>
    %81 = arith.subf %77, %78 : vector<1x1xf32>
    %82 = math.exp %81 : vector<1x1xf32>
    %83 = arith.addf %80, %82 : vector<1x1xf32>
    %84 = arith.divf %80, %83 : vector<1x1xf32>
    %85 = arith.divf %82, %83 : vector<1x1xf32>
    %86 = vector.extract_strided_slice %61 {offsets = [32, 0], sizes = [8, 1], strides = [1, 1]} : vector<48x1xf32> to vector<8x1xf32>
    %87 = vector.shape_cast %86 : vector<8x1xf32> to vector<1x8x1xf32>
    %cst_43 = arith.constant dense<0.000000e+00> : vector<1xf32>
    %88 = vector.multi_reduction <add>, %87, %cst_43 [1, 2] : vector<1x8x1xf32> to vector<1xf32>
    %89 = vector.shape_cast %88 : vector<1xf32> to vector<1x1x1xf32>
    %90 = vector.extract %89[0, 0, 0] : f32 from vector<1x1x1xf32>
    %91 = vector.broadcast %90 : f32 to vector<1x1xf32>
    %cst_44 = arith.constant 8.000000e+00 : f32
    %92 = vector.broadcast %cst_44 : f32 to vector<1x1xf32>
    %93 = arith.divf %91, %92 : vector<1x1xf32>
    %94 = vector.extract_strided_slice %61 {offsets = [40, 0], sizes = [8, 1], strides = [1, 1]} : vector<48x1xf32> to vector<8x1xf32>
    %95 = vector.shape_cast %94 : vector<8x1xf32> to vector<1x8x1xf32>
    %cst_45 = arith.constant dense<0.000000e+00> : vector<1xf32>
    %96 = vector.multi_reduction <add>, %95, %cst_45 [1, 2] : vector<1x8x1xf32> to vector<1xf32>
    %97 = vector.shape_cast %96 : vector<1xf32> to vector<1x1x1xf32>
    %98 = vector.extract %97[0, 0, 0] : f32 from vector<1x1x1xf32>
    %99 = vector.broadcast %98 : f32 to vector<1x1xf32>
    %cst_46 = arith.constant 8.000000e+00 : f32
    %100 = vector.broadcast %cst_46 : f32 to vector<1x1xf32>
    %101 = arith.divf %99, %100 : vector<1x1xf32>
    %102 = arith.maximumf %93, %101 : vector<1x1xf32>
    %103 = arith.subf %93, %102 : vector<1x1xf32>
    %104 = math.exp %103 : vector<1x1xf32>
    %105 = arith.subf %101, %102 : vector<1x1xf32>
    %106 = math.exp %105 : vector<1x1xf32>
    %107 = arith.addf %104, %106 : vector<1x1xf32>
    %108 = arith.divf %104, %107 : vector<1x1xf32>
    %109 = arith.divf %106, %107 : vector<1x1xf32>
    %110 = vector.extract_strided_slice %42 {offsets = [0, 0], sizes = [16, 32], strides = [1, 1]} : vector<16x64xf32> to vector<16x32xf32>
    %111 = vector.broadcast %84 : vector<1x1xf32> to vector<16x32xf32>
    %112 = arith.mulf %111, %110 : vector<16x32xf32>
    %113 = vector.extract_strided_slice %35 {offsets = [0, 0], sizes = [8, 32], strides = [1, 1]} : vector<8x64xf32> to vector<8x32xf32>
    %114 = vector.broadcast %108 : vector<1x1xf32> to vector<8x32xf32>
    %115 = arith.mulf %114, %113 : vector<8x32xf32>
    %116 = vector.extract_strided_slice %42 {offsets = [0, 32], sizes = [16, 32], strides = [1, 1]} : vector<16x64xf32> to vector<16x32xf32>
    %117 = vector.broadcast %85 : vector<1x1xf32> to vector<16x32xf32>
    %118 = arith.mulf %117, %116 : vector<16x32xf32>
    %119 = arith.addf %112, %118 : vector<16x32xf32>
    %120 = vector.extract_strided_slice %35 {offsets = [0, 32], sizes = [8, 32], strides = [1, 1]} : vector<8x64xf32> to vector<8x32xf32>
    %121 = vector.broadcast %109 : vector<1x1xf32> to vector<8x32xf32>
    %122 = arith.mulf %121, %120 : vector<8x32xf32>
    %123 = arith.addf %115, %122 : vector<8x32xf32>
    %c0_47 = arith.constant 0 : index
    %c0_48 = arith.constant 0 : index
    %124 = vector.load %arg13[%c0_47, %c0_48] : memref<16x32xf32, #tpu.memory_space<vmem>>, vector<16x32xf32>
    tpu.vector_store %arg13[%c0_47, %c0_48], %119 {strides = array<i32>} : memref<16x32xf32, #tpu.memory_space<vmem>>, vector<16x32xf32>,
    %c0_49 = arith.constant 0 : index
    %c0_50 = arith.constant 0 : index
    %125 = vector.load %arg12[%c0_49, %c0_50] : memref<8x32xf32, #tpu.memory_space<vmem>>, vector<8x32xf32>
    tpu.vector_store %arg12[%c0_49, %c0_50], %123 {strides = array<i32>} : memref<8x32xf32, #tpu.memory_space<vmem>>, vector<8x32xf32>,
    return
  }
}

</mosaic_0001>

<bundles_post_ra>
// kernel: tpu_custom_call.1
= control target key start
LH: loop header
LB: loop body
LE: loop exit
PB: predicated region body
PF: predicated region fallthrough
CT: control target
= control target key end

     0   :  { %22 = vsyncpa [#allocation4], 0  ;;  %s1319_s0 = inlined_call_operand.<no memory space> [shape: s32[1], index: 0, kind: input, shape index: {}]   ;;  %s1320_s1 = inlined_call_operand.hbm [shape: f32[8,16], index: 1, kind: input, shape index: {}]   ;;  %s1321_s2 = inlined_call_operand.vmem [shape: bf16[2,16,8], index: 2, kind: input, shape index: {}]   ;;  %s1322_s3 = inlined_call_operand.hbm [shape: bf16[16,64], index: 3, kind: input, shape index: {}]   ;;  %s1323_s4 = inlined_call_operand.hbm [shape: f32[1,64], index: 4, kind: input, shape index: {}]   ;;  %s1324_s5 = inlined_call_operand.hbm [shape: bf16[16,32], index: 5, kind: input, shape index: {}]   ;;  %s1325_s6 = inlined_call_operand.hbm [shape: f32[1,32], index: 6, kind: input, shape index: {}]   ;;  %s1326_s7 = inlined_call_operand.vmem [shape: bf16[32,32], index: 7, kind: input, shape index: {}]   ;;  %s1327_s8 = inlined_call_operand.hbm [shape: f32[1,32], index: 8, kind: input, shape index: {}]   ;;  %s1328_s9 = inlined_call_operand.hbm [shape: f32[1,32], index: 9, kind: input, shape index: {}]   ;;  %s1329_s10 = inlined_call_operand.vmem [shape: f32[8,64], index: 10, kind: input, shape index: {}]   ;;  %s1330_s11 = inlined_call_operand.vmem [shape: f32[16,64], index: 11, kind: input, shape index: {}]   ;;  %s1331_s12 = inlined_call_operand.hbm [shape: f32[8,32], index: 12, kind: output, shape index: {0}]   ;;  %s1332_s13 = inlined_call_operand.hbm [shape: f32[16,32], index: 13, kind: output, shape index: {1}]   ;;  %s1333_s14 = inlined_call_operand.hbm [shape: f32[8,64], index: 14, kind: output, shape index: {2}]   ;;  %s1334_s15 = inlined_call_operand.hbm [shape: f32[16,64], index: 15, kind: output, shape index: {3}]  }
   0x1   :  { %23 = vsyncpa [#allocation7], 0 }
   0x2   :  { %24 = vsyncpa [#allocation10], 0 }
   0x3   :  { %25 = vsyncpa [#allocation13], 0 }
   0x4   :  { %26 = vsyncpa [#allocation5], 0 }
   0x5   :  { %27 = vsyncpa [#allocation17], 0 }
   0x6   :  { %28 = vsyncpa [#allocation20], 0  ;;  %s1080_s18 = smov [#allocation6]  }
   0x7   :  { %s48_s19 = sshll.u32 %s1080_s18, 4  ;;  %s49_s19 = int_to_ptr.vmem [resolvable:$true] %s48_s19 }
   0x8   :  { %s854_s20 = scalar_lea.vmem %s49_s19, 128  ;;  %p859_p1 = scmp.lt.s32.totalorder %s49_s19, %s49_s19 }
   0x9   :  { %p855_p0 = scmp.ne.s32.totalorder %s49_s19, %s854_s20  ;;  %p860_p2 = scmp.lt.s32.totalorder %s854_s20, %s854_s20 }
   0xb   :  { %p861_p3 = por %p860_p2, %p859_p1 }
   0xd   :  { %p862_p4 = pnand %p861_p3, %p855_p0 }
   0xf   :  { %865 = shalt.err (!%p862_p4)
}
  0x10   :  { %s1081_s21 = smov 64   ;;  %s1082_s22 = smov 4  }
  0x11   :  { %54 = dma.hbm_to_vmem [thread:$0]  %s1322_s3, 128, %s49_s19, [#allocation7], %s1081_s21, %s1081_s21, %s1082_s22  }
  0x12   :  { %s1083_s25 = smov [#allocation9]   ;;  %s1084_s27 = smov [#allocation12]  }
  0x13   :  { %s70_s26 = sshll.u32 %s1083_s25, 4  ;;  %s95_s28 = sshll.u32 %s1084_s27, 4  ;;  %s71_s26 = int_to_ptr.vmem [resolvable:$true] %s70_s26  ;;  %s96_s28 = int_to_ptr.vmem [resolvable:$true] %s95_s28 }
  0x14   :  { %s874_s29 = scalar_lea.vmem %s71_s26, 128  ;;  %p879_p6 = scmp.lt.s32.totalorder %s71_s26, %s71_s26 }
  0x15   :  { %p875_p5 = scmp.ne.s32.totalorder %s71_s26, %s874_s29  ;;  %p880_p7 = scmp.lt.s32.totalorder %s874_s29, %s874_s29 }
  0x17   :  { %p881_p8 = por %p880_p7, %p879_p6 }
  0x19   :  { %p882_p9 = pnand %p881_p8, %p875_p5 }
  0x1b   :  { %885 = shalt.err (!%p882_p9)
}
  0x1c   :  { %76 = dma.hbm_to_vmem [thread:$0]  %s1324_s5, 128, %s71_s26, [#allocation10], %s1081_s21, %s1081_s21, %s1082_s22  }
  0x1d   :  { %s894_s17 = scalar_lea.vmem %s96_s28, 16  ;;  %s898_s3 = scalar_lea.vmem %s96_s28, 32 }
  0x1e   :  { %p895_p10 = scmp.ne.s32.totalorder %s96_s28, %s894_s17  ;;  %p899_p11 = scmp.lt.s32.totalorder %s96_s28, %s96_s28 }
  0x1f   :  { %p900_p12 = scmp.lt.s32.totalorder %s898_s3, %s894_s17 }
  0x21   :  { %p901_p13 = por %p900_p12, %p899_p11 }
  0x23   :  { %p902_p0 = pnand %p901_p13, %p895_p10 }
  0x25   :  { %905 = shalt.err (!%p902_p0)
}
  0x26   :  { %98 = dma.hbm_to_vmem [thread:$0]  %s1327_s8, 16, %s96_s28, [#allocation13]  }
  0x27   :  { %s1085_s20 = smov [#allocation3]   ;;  %s1086_s24 = smov [#allocation8]  }
  0x28   :  { %s37_s23 = sshll.u32 %s1085_s20, 4  ;;  %s61_s25 = sshll.u32 %s1086_s24, 4  ;;  %s38_s23 = int_to_ptr.vmem [resolvable:$true] %s37_s23  ;;  %s62_s25 = int_to_ptr.vmem [resolvable:$true] %s61_s25 }
  0x29   :  { %s914_s27 = scalar_lea.vmem %s38_s23, 128  ;;  %p919_p2 = scmp.lt.s32.totalorder %s38_s23, %s38_s23 }
  0x2a   :  { %p915_p1 = scmp.ne.s32.totalorder %s38_s23, %s914_s27  ;;  %p920_p3 = scmp.lt.s32.totalorder %s914_s27, %s914_s27 }
  0x2c   :  { %p921_p4 = por %p920_p3, %p919_p2 }
  0x2e   :  { %p922_p5 = pnand %p921_p4, %p915_p1 }
  0x30   :  { %925 = shalt.err (!%p922_p5)
}
  0x31   :  { %40 = dma.hbm_to_vmem [thread:$0]  %s1320_s1, 128, %s38_s23, [#allocation4]  }
  0x32   :  { %s934_s22 = scalar_lea.vmem %s62_s25, 16  ;;  %s938_s8 = scalar_lea.vmem %s62_s25, 32 }
  0x33   :  { %p935_p6 = scmp.ne.s32.totalorder %s62_s25, %s934_s22  ;;  %p939_p7 = scmp.lt.s32.totalorder %s62_s25, %s62_s25 }
  0x34   :  { %p940_p8 = scmp.lt.s32.totalorder %s938_s8, %s934_s22 }
  0x36   :  { %p941_p9 = por %p940_p8, %p939_p7 }
  0x38   :  { %p942_p10 = pnand %p941_p9, %p935_p6 }
  0x3a   :  { %945 = shalt.err (!%p942_p10)
}
  0x3b   :  { %64 = dma.hbm_to_vmem [thread:$0]  %s1323_s4, 16, %s62_s25, [#allocation7]  }
  0x3c   :  { %s1087_s29 = smov [#allocation11]   ;;  %s1088_s16 = smov [#allocation14]  }
  0x3d   :  { %s83_s30 = sshll.u32 %s1087_s29, 4  ;;  %s105_s17 = sshll.u32 %s1088_s16, 4  ;;  %s84_s30 = int_to_ptr.vmem [resolvable:$true] %s83_s30  ;;  %s106_s17 = int_to_ptr.vmem [resolvable:$true] %s105_s17 }
  0x3e   :  { %s954_s3 = scalar_lea.vmem %s84_s30, 16  ;;  %s958_s1 = scalar_lea.vmem %s84_s30, 32 }
  0x3f   :  { %p955_p11 = scmp.ne.s32.totalorder %s84_s30, %s954_s3  ;;  %p959_p12 = scmp.lt.s32.totalorder %s84_s30, %s84_s30 }
  0x40   :  { %p960_p13 = scmp.lt.s32.totalorder %s958_s1, %s954_s3 }
  0x42   :  { %p961_p0 = por %p960_p13, %p959_p12 }
  0x44   :  { %p962_p1 = pnand %p961_p0, %p955_p11 }
  0x46   :  { %965 = shalt.err (!%p962_p1)
}
  0x47   :  { %86 = dma.hbm_to_vmem [thread:$0]  %s1325_s6, 16, %s84_s30, [#allocation10]  }
  0x48   :  { %s974_s20 = scalar_lea.vmem %s106_s17, 16  ;;  %s978_s4 = scalar_lea.vmem %s106_s17, 32 }
  0x49   :  { %p975_p2 = scmp.ne.s32.totalorder %s106_s17, %s974_s20  ;;  %p979_p3 = scmp.lt.s32.totalorder %s106_s17, %s106_s17 }
  0x4a   :  { %p980_p4 = scmp.lt.s32.totalorder %s978_s4, %s974_s20 }
  0x4c   :  { %p981_p5 = por %p980_p4, %p979_p3 }
  0x4e   :  { %p982_p6 = pnand %p981_p5, %p975_p2 }
  0x50   :  { %985 = shalt.err (!%p982_p6)
}
  0x51   :  { %108 = dma.hbm_to_vmem [thread:$0]  %s1328_s9, 16, %s106_s17, [#allocation13]  }
  0x52   :  { %1066 = dma.done.wait [#allocation4], 128  }
  0x53   :  { %1067 = vsyncadd [#allocation4], 4294967168 }
  0x54   :  { %1068 = dma.done.wait [#allocation7], 144  }
  0x55   :  { %1069 = vsyncadd [#allocation7], 4294967152 }
  0x56   :  { %1070 = dma.done.wait [#allocation10], 144  }
  0x57   :  { %1071 = vsyncadd [#allocation10], 4294967152 }
  0x58   :  { %1072 = dma.done.wait [#allocation13], 32  }
  0x59   :  { %1073 = vsyncadd [#allocation13], 4294967264  ;;  %v1089_v0 = vmov 0.0   ;;  %vm1090_vm0 = vmmov 0   ;;  %v816_v1 = vld [vmem:[#allocation9] sm:$0xff]   ;;  %v135_v2 = vld [vmem:[#allocation3] sm:$0xff] }
  0x5a   :  { %744 = vmatprep.subr.bf16.mxu1 %v1089_v0  ;;  %746 = vmatprep.mubr.msk.bf16.mxu1 %vm1090_vm0, %v1089_v0  ;;  %v136_v3 = vpack.c.bf16 %v135_v2, %v135_v2  ;;  %vm152_vm1 = vcmask 130048   ;;  %v817_v4 = vld [vmem:[#allocation6] sm:$0xff]   ;;  %vm263_vm2 = vcmask 1043456   ;;  %s1091_s6 = smov 96   ;;  %v819_v13 = vld [vmem:[%s1321_s2] sm:$0xff]   ;;  %vm259_vm3 = vcmask 64512  }
  0x5b   :  { %756 = vmatprep.subr.bf16.mxu0 %v1089_v0  ;;  %758 = vmatprep.mubr.msk.bf16.mxu0 %vm1090_vm0, %v1089_v0  ;;  %v717_v15 = vld [vmem:[#allocation8] ss:$0 sm:$0xff]  ;;  %v712_v16 = vld [vmem:[#allocation11] ss:$0 sm:$0xff]  ;;  %s1092_s27 = smov 32   ;;  %p386_p7 = scmp.gt.s32.totalorder %s1319_s0, 0 }
  0x5c   :  { %745 = vmatpush3.bf16.msra.mxu1 %v816_v1  ;;  %v818_v21 = vld [vmem:[%s1321_s2 + $0x8] sm:$0xff]   ;;  %v388_v23 = vld [vmem:[%s1329_s10] sm:$0xff]  ;;  %vm377_vm4 = vcmask 261120   ;;  %vm403_vm5 = vcmask 523264   ;;  %v724_v2 = vld [vmem:[#allocation12] ss:$0 sm:$0xff] }
  0x5d   :  { %750 = vmatprep.subr.bf16.mxu1 %v1089_v0  ;;  %s387_s22 = scalar_select %p386_p7, 0.05, 0.0  ;;  %v820_v35 = vld [vmem:[%s1326_s7 + $0x8] sm:$0xff]   ;;  %v821_v36 = vld [vmem:[%s1326_s7] sm:$0xff]   ;;  %vm548_vm6 = vcmask 7168  }
  0x5e   :  { %v395_v44 = vld [vmem:[%s1330_s11] sm:$0xff]  ;;  %v396_v48 = vld [vmem:[%s1330_s11 + $0x8] sm:$0xff]  ;;  %s1093_s4 = smov [#allocation19]  }
  0x5f   :  { %747 = vmatmul.mubr.msk.bf16.vlgmr.msra.gmra.mxu1 %vm152_vm1, %v136_v3  ;;  %s391_s28 = ssub.f32 1.0, %s387_s22  ;;  %v389_v24 = vstv %s387_s22  ;;  %s686_s23 = sshll.u32 %s1093_s4, 4  ;;  %s687_s23 = int_to_ptr.vmem [resolvable:$true] %s686_s23 }
  0x60   :  { %751 = vmatpush3.bf16.msra.mxu1 %v817_v4  ;;  %752 = vmatprep.mubr.msk.bf16.mxu1 %vm1090_vm0, %v1089_v0  ;;  %v390_v26 = vmul.f32 %v389_v24, %v388_v23  ;;  %v397_v45 = vmul.f32 %v395_v44, %v389_v24  ;;  %v398_v52 = vmul.f32 %v396_v48, %v389_v24  ;;  %s986_s24 = scalar_lea.vmem %s687_s23, 256  ;;  %p991_p9 = scmp.lt.s32.totalorder %s687_s23, %s687_s23 }
  0x61   :  { %762 = vmatprep.subr.bf16.mxu1 %v1089_v0  ;;  %v392_v25 = vstv %s391_s28  ;;  %p987_p8 = scmp.ne.s32.totalorder %s687_s23, %s986_s24  ;;  %p992_p10 = scmp.lt.s32.totalorder %s986_s24, %s986_s24 }
  0x63   :  { %p993_p11 = por %p992_p10, %p991_p9 }
  0x65   :  { %p994_p12 = pnand %p993_p11, %p987_p8 }
  0x67   :  { %753 = vmatmul.mubr.msk.bf16.vlgmr.msra.gmra.mxu1 %vm152_vm1, %v136_v3 }
  0x68   :  { %764 = vmatprep.mubr.msk.bf16.mxu1 %vm1090_vm0, %v1089_v0 }
 0x11f   :  { %v190_v5 = vpop.f32.mrf.mxu1 }
 0x120   :  { %v191_v18 = vadd.f32 %v712_v16, %v190_v5 }
 0x121   :  { %v748_v6 = vpop.f32.mrf.mxu1 }
 0x123   :  { %v193_v7 = vpop.f32.mrf.mxu1 }
 0x125   :  { %v749_v8 = vpop.f32.mrf.mxu1 }
 0x127   :  { %v238_v9 = vpop.f32.mrf.mxu1 }
 0x128   :  { %v244_v10 = vpack.c.bf16 %v238_v9, %v238_v9  ;;  %v730_v9 = vld [vmem:[#allocation14] ss:$0 sm:$0xff] }
 0x129   :  { %v754_v11 = vpop.f32.mrf.mxu1 }
 0x12a   :  { %317 = vrot.lane.b32.xlu0 %v244_v10, %s1091_s6  ;;  %v265_v12 = vsel %vm263_vm2, %v244_v10, 0 }
 0x12b   :  { %v241_v14 = vpop.f32.mrf.mxu1  ;;  %757 = vmatpush3.bf16.msra.mxu0 %v265_v12 }
 0x12c   :  { %768 = vmatprep.subr.bf16.mxu0 %v1089_v0 }
 0x12d   :  { %v755_v17 = vpop.f32.mrf.mxu1 }
 0x12e   :  { %319 = vrot.lane.b32.xlu0 %v717_v15, %s1091_s6  ;;  %759 = vmatmul.mubr.msk.bf16.vlgmr.msra.gmra.mxu0 %vm259_vm3, %v819_v13 }
 0x12f   :  { %772 = vmatprep.mubr.msk.bf16.mxu0 %vm1090_vm0, %v1089_v0  ;;  %769 = vmatpush3.bf16.msra.mxu0 %v820_v35 }
 0x130   :  { %770 = vmatprep.subr.bf16.mxu0 %v1089_v0 }
 0x132   :  { %381 = vrot.lane.b32.xlu0 %v191_v18, %s1092_s27 }
 0x133   :  { %771 = vmatpush3.bf16.msra.mxu0 %v821_v36 }
 0x19c   :  { %v318_v19 = vpop.permute.xlu0 %317 }
 0x19d   :  { %v326_v20 = vsel %vm263_vm2, %v318_v19, 0 }
 0x19e   :  { %763 = vmatpush3.bf16.msra.mxu1 %v326_v20 }
 0x1a0   :  { %v320_v22 = vpop.permute.xlu0 %319 }
 0x1a1   :  { %765 = vmatmul.mubr.msk.bf16.vlgmr.msra.gmra.mxu1 %vm259_vm3, %v818_v21 }
 0x1a4   :  { %v382_v27 = vpop.permute.xlu0 %381 }
 0x1a5   :  { %v384_v28 = vsel %vm377_vm4, %v191_v18, %v382_v27 }
 0x1a6   :  { %v393_v29 = vmul.f32 %v392_v25, %v384_v28 }
 0x1a8   :  { %v1233_v30 = vadd.f32 %v393_v29, %v390_v26 }
 0x1aa   :  { %416 = vrot.lane.b32.xlu0 %v1233_v30, %s1091_s6  ;;  %404 = vst.msk [vmem:[#allocation18] sm:$0xff] %vm403_vm5, %v1233_v30 }
 0x1ee   :  { %v301_v31 = vpop.f32.mrf.mxu0 }
 0x1ef   :  { %v302_v43 = vadd.f32 %v717_v15, %v301_v31 }
 0x1f0   :  { %v760_v32 = vpop.f32.mrf.mxu0 }
 0x1f2   :  { %v304_v33 = vpop.f32.mrf.mxu0 }
 0x1f3   :  { %v305_v50 = vadd.f32 %v717_v15, %v304_v33 }
 0x1f4   :  { %v761_v34 = vpop.f32.mrf.mxu0 }
 0x21c   :  { %v417_v63 = vpop.permute.xlu0 %416 }
 0x21d   :  { %v421_v1 = vpack.c.bf16 %v417_v63, %v1233_v30 }
 0x261   :  { %v362_v37 = vpop.f32.mrf.mxu1 }
 0x262   :  { %v363_v38 = vadd.f32 %v362_v37, %v320_v22 }
 0x263   :  { %v766_v39 = vpop.f32.mrf.mxu1 }
 0x264   :  { %371 = vrot.lane.b32.xlu1 %v363_v38, %s1092_s27 }
 0x265   :  { %v365_v40 = vpop.f32.mrf.mxu1 }
 0x266   :  { %v366_v41 = vadd.f32 %v365_v40, %v320_v22 }
 0x267   :  { %v767_v42 = vpop.f32.mrf.mxu1 }
 0x268   :  { %373 = vrot.lane.b32.xlu1 %v366_v41, %s1092_s27 }
 0x2d6   :  { %v372_v46 = vpop.permute.xlu1 %371 }
 0x2d7   :  { %v378_v47 = vsel %vm377_vm4, %v302_v43, %v372_v46 }
 0x2d8   :  { %v399_v49 = vmul.f32 %v392_v25, %v378_v47 }
 0x2da   :  { %v1255_v51 = vadd.f32 %v399_v49, %v397_v45  ;;  %v374_v53 = vpop.permute.xlu1 %373 }
 0x2db   :  { %v379_v54 = vsel %vm377_vm4, %v305_v50, %v374_v53 }
 0x2dc   :  { %v400_v55 = vmul.f32 %v392_v25, %v379_v54  ;;  %405 = vst.msk [vmem:[#allocation19] sm:$0xff] %vm403_vm5, %v1255_v51 }
 0x2de   :  { %v1260_v56 = vadd.f32 %v400_v55, %v398_v52 }
 0x2e0   :  { %v811_v57 = vpack.i.bf16 %v1260_v56, %v1255_v51  ;;  %v419_v58 = vpack.c.bf16 %v1260_v56, %v1255_v51  ;;  %406 = vst.msk [vmem:[#allocation19 + $0x8] sm:$0xff] %vm403_vm5, %v1260_v56 }
 0x2e2   :  { %812 = vrot.lane.b32.xlu1 %v811_v57, %s1091_s6  ;;  %773 = vmatmul.mubr.msk.bf16.vlgmr.msra.gmra.mxu0 %vm377_vm4, %v419_v58 }
 0x2e3   :  { %776 = vmatprep.mubr.msk.bf16.mxu0 %vm1090_vm0, %v1089_v0 }
 0x354   :  { %v813_v59 = vpop.permute.xlu1 %812 }
 0x355   :  { %v815_v60 = vunpack.i.h.bf16 %v813_v59  ;;  %v814_v61 = vunpack.i.l.bf16 %v813_v59 }
 0x357   :  { %v420_v62 = vpack.c.bf16 %v815_v60, %v814_v61 }
 0x359   :  { %777 = vmatmul.mubr.msk.bf16.gmra.mxu0 %vm377_vm4, %v420_v62 }
 0x35a   :  { %780 = vmatprep.mubr.msk.bf16.mxu0 %vm1090_vm0, %v1089_v0 }
 0x361   :  { %781 = vmatmul.mubr.msk.bf16.gmra.mxu0 %vm377_vm4, %v421_v1 }
 0x3a2   :  { %v488_v3 = vpop.f32.mrf.mxu0 }
 0x3a3   :  { %v489_v4 = vadd.f32 %v724_v2, %v488_v3 }
 0x3a4   :  { %v774_v5 = vpop.f32.mrf.mxu0 }
 0x3a5   :  { %822 = vtanh.f32 %v489_v4 }
 0x3a6   :  { %v491_v6 = vpop.f32.mrf.mxu0 }
 0x3a7   :  { %v492_v7 = vadd.f32 %v724_v2, %v491_v6 }
 0x3a8   :  { %v775_v8 = vpop.f32.mrf.mxu0 }
 0x3a9   :  { %824 = vtanh.f32 %v492_v7 }
 0x3b2   :  { %v823_v10 = vpop.eup %822 }
 0x3b3   :  { %v524_v11 = vmul.f32 %v823_v10, %v730_v9 }
 0x3b5   :  { %v530_v12 = vsel %vm377_vm4, %v524_v11, 0.0 }
 0x3b6   :  { %v825_v0 = vpop.eup %824  ;;  %531 = vadd.xlane.f32.xlu1 %v530_v12 }
 0x3b7   :  { %v525_v13 = vmul.f32 %v825_v0, %v730_v9 }
 0x3b9   :  { %v533_v14 = vsel %vm377_vm4, %v525_v13, 0.0 }
 0x3ba   :  { %534 = vadd.xlane.f32.xlu0 %v533_v14 }
 0x419   :  { %v496_v15 = vpop.f32.mrf.mxu0 }
 0x41a   :  { %v497_v16 = vadd.f32 %v724_v2, %v496_v15 }
 0x41b   :  { %v778_v17 = vpop.f32.mrf.mxu0 }
 0x41c   :  { %826 = vtanh.f32 %v497_v16 }
 0x41d   :  { %v499_v18 = vpop.f32.mrf.mxu0 }
 0x41e   :  { %v500_v19 = vadd.f32 %v724_v2, %v499_v18 }
 0x41f   :  { %v779_v20 = vpop.f32.mrf.mxu0 }
 0x420   :  { %828 = vtanh.f32 %v500_v19 }
 0x421   :  { %v504_v21 = vpop.f32.mrf.mxu0 }
 0x422   :  { %v505_v22 = vadd.f32 %v724_v2, %v504_v21 }
 0x423   :  { %v782_v23 = vpop.f32.mrf.mxu0 }
 0x424   :  { %830 = vtanh.f32 %v505_v22 }
 0x425   :  { %v507_v24 = vpop.f32.mrf.mxu0 }
 0x426   :  { %v508_v25 = vadd.f32 %v724_v2, %v507_v24 }
 0x427   :  { %v783_v26 = vpop.f32.mrf.mxu0 }
 0x428   :  { %832 = vtanh.f32 %v508_v25 }
 0x429   :  { %v827_v27 = vpop.eup %826 }
 0x42a   :  { %v526_v28 = vmul.f32 %v827_v27, %v730_v9 }
 0x42c   :  { %v536_v29 = vsel %vm377_vm4, %v526_v28, 0.0 }
 0x42d   :  { %v829_v31 = vpop.eup %828  ;;  %537 = vadd.xlane.f32.xlu0 %v536_v29 }
 0x42e   :  { %v527_v32 = vmul.f32 %v829_v31, %v730_v9 }
 0x430   :  { %v539_v33 = vsel %vm377_vm4, %v527_v32, 0.0 }
 0x431   :  { %v831_v34 = vpop.eup %830  ;;  %540 = vadd.xlane.f32.xlu1 %v539_v33 }
 0x432   :  { %v528_v35 = vmul.f32 %v831_v34, %v730_v9 }
 0x434   :  { %v542_v36 = vsel %vm377_vm4, %v528_v35, 0.0 }
 0x435   :  { %v833_v37 = vpop.eup %832  ;;  %543 = vadd.xlane.f32.xlu0 %v542_v36 }
 0x436   :  { %v529_v38 = vmul.f32 %v833_v37, %v730_v9 }
 0x438   :  { %v545_v39 = vsel %vm377_vm4, %v529_v38, 0.0 }
 0x439   :  { %546 = vadd.xlane.f32.xlu1 %v545_v39 }
 0x43f   :  { %v532_v40 = vpop.xlane.xlu1 %531 }
 0x440   :  { %v549_v42 = vsel %vm548_vm6, %v532_v40, 0.0 }
 0x443   :  { %v535_v41 = vpop.xlane.xlu0 %534 }
 0x444   :  { %v550_v43 = vsel %vm548_vm6, %v535_v41, 0.0 }
 0x445   :  { %v551_v44 = vadd.f32 %v550_v43, %v549_v42 }
 0x447   :  { %552 = vadd.xlane.f32.xlu0 %v551_v44 }
 0x4b6   :  { %v538_v45 = vpop.xlane.xlu0 %537 }
 0x4b7   :  { %v564_v47 = vsel %vm548_vm6, %v538_v45, 0.0 }
 0x4ba   :  { %v541_v46 = vpop.xlane.xlu1 %540 }
 0x4bb   :  { %v565_v48 = vsel %vm548_vm6, %v541_v46, 0.0 }
 0x4bc   :  { %v566_v49 = vadd.f32 %v565_v48, %v564_v47 }
 0x4be   :  { %v544_v50 = vpop.xlane.xlu0 %543  ;;  %567 = vadd.xlane.f32.xlu1 %v566_v49 }
 0x4bf   :  { %v589_v52 = vsel %vm548_vm6, %v544_v50, 0.0 }
 0x4c0   :  { %590 = vadd.xlane.f32.xlu0 %v589_v52 }
 0x4c2   :  { %v547_v53 = vpop.xlane.xlu1 %546 }
 0x4c3   :  { %v602_v54 = vsel %vm548_vm6, %v547_v53, 0.0 }
 0x4c4   :  { %603 = vadd.xlane.f32.xlu1 %v602_v54 }
 0x4d0   :  { %v553_v55 = vpop.xlane.xlu0 %552 }
 0x4d1   :  { %v554_v57 = vrot.slane %v553_v55, 4 }
 0x4d3   :  { %v555_v58 = vadd.f32 %v554_v57, %v553_v55 }
 0x4d5   :  { %v556_v59 = vrot.slane %v555_v58, 2 }
 0x4d7   :  { %v557_v60 = vadd.f32 %v556_v59, %v555_v58 }
 0x4d9   :  { %v558_v61 = vrot.slane %v557_v60, 1 }
 0x4db   :  { %v559_v62 = vadd.f32 %v558_v61, %v557_v60 }
 0x4dd   :  { %784 = vpush %v559_v62 }
 0x50e   :  { %s785_s11 = spop %784 }
 0x50f   :  { %v561_v20 = vstv %s785_s11 }
 0x510   :  { %v563_v22 = vmul.f32 0.0625, %v561_v20 }
 0x547   :  { %v568_v63 = vpop.xlane.xlu1 %567 }
 0x548   :  { %v569_v1 = vrot.slane %v568_v63, 4 }
 0x549   :  { %v591_v2 = vpop.xlane.xlu0 %590 }
 0x54a   :  { %v570_v3 = vadd.f32 %v569_v1, %v568_v63  ;;  %v592_v4 = vrot.slane %v591_v2, 4 }
 0x54c   :  { %v571_v5 = vrot.slane %v570_v3, 2  ;;  %v593_v6 = vadd.f32 %v592_v4, %v591_v2 }
 0x54d   :  { %v604_v7 = vpop.xlane.xlu1 %603 }
 0x54e   :  { %v594_v8 = vrot.slane %v593_v6, 2  ;;  %v605_v9 = vrot.slane %v604_v7, 4  ;;  %v572_v10 = vadd.f32 %v571_v5, %v570_v3 }
 0x550   :  { %v606_v11 = vadd.f32 %v605_v9, %v604_v7  ;;  %v573_v12 = vrot.slane %v572_v10, 1  ;;  %v595_v0 = vadd.f32 %v594_v8, %v593_v6 }
 0x552   :  { %v607_v13 = vrot.slane %v606_v11, 2  ;;  %v574_v14 = vadd.f32 %v573_v12, %v572_v10  ;;  %v596_v15 = vrot.slane %v595_v0, 1 }
 0x554   :  { %786 = vpush %v574_v14  ;;  %v597_v16 = vadd.f32 %v596_v15, %v595_v0  ;;  %v608_v17 = vadd.f32 %v607_v13, %v606_v11 }
 0x556   :  { %788 = vpush %v597_v16  ;;  %v609_v18 = vrot.slane %v608_v17, 1 }
 0x558   :  { %v610_v19 = vadd.f32 %v609_v18, %v608_v17 }
 0x55a   :  { %790 = vpush %v610_v19 }
 0x585   :  { %s787_s18 = spop %786 }
 0x586   :  { %v576_v21 = vstv %s787_s18 }
 0x587   :  { %v577_v23 = vmul.f32 0.0625, %v576_v21  ;;  %s789_s19 = spop %788 }
 0x588   :  { %v599_v25 = vstv %s789_s19 }
 0x589   :  { %v578_v24 = vmax.f32 %v563_v22, %v577_v23  ;;  %v601_v32 = vmul.f32 0.125, %v599_v25 }
 0x58b   :  { %v579_v26 = vsub.f32 %v563_v22, %v578_v24  ;;  %v582_v27 = vsub.f32 %v577_v23, %v578_v24  ;;  %s791_s20 = spop %790 }
 0x58c   :  { %v612_v28 = vstv %s791_s20 }
 0x58d   :  { %v580_v29 = vmul.f32 1.442695, %v579_v26  ;;  %v583_v31 = vmul.f32 1.442695, %v582_v27  ;;  %v613_v33 = vmul.f32 0.125, %v612_v28 }
 0x58f   :  { %834 = vpow2.f32 %v580_v29  ;;  %v614_v34 = vmax.f32 %v601_v32, %v613_v33 }
 0x590   :  { %836 = vpow2.f32 %v583_v31 }
 0x591   :  { %v615_v35 = vsub.f32 %v601_v32, %v614_v34  ;;  %v618_v36 = vsub.f32 %v613_v33, %v614_v34 }
 0x593   :  { %v616_v37 = vmul.f32 1.442695, %v615_v35  ;;  %v619_v38 = vmul.f32 1.442695, %v618_v36 }
 0x595   :  { %838 = vpow2.f32 %v616_v37 }
 0x596   :  { %840 = vpow2.f32 %v619_v38 }
 0x59c   :  { %v835_v39 = vpop.eup %834 }
 0x59d   :  { %v837_v40 = vpop.eup %836 }
 0x59e   :  { %v585_v41 = vadd.f32 %v837_v40, %v835_v39 }
 0x5a0   :  { %842 = vrcp.f32 %v585_v41 }
 0x5a2   :  { %v839_v42 = vpop.eup %838 }
 0x5a3   :  { %v841_v43 = vpop.eup %840 }
 0x5a4   :  { %v621_v44 = vadd.f32 %v841_v43, %v839_v42 }
 0x5a6   :  { %844 = vrcp.f32 %v621_v44 }
 0x5ad   :  { %v843_v45 = vpop.eup %842 }
 0x5ae   :  { %v588_v46 = vmul.f32 %v843_v45, %v837_v40  ;;  %v587_v47 = vmul.f32 %v843_v45, %v835_v39 }
 0x5b0   :  { %v629_v48 = vmul.f32 %v588_v46, %v1260_v56  ;;  %v628_v49 = vmul.f32 %v588_v46, %v1255_v51 }
 0x5b2   :  { %634 = vrot.lane.b32.xlu1 %v629_v48, %s1091_s6  ;;  %632 = vrot.lane.b32.xlu0 %v628_v49, %s1091_s6 }
 0x5b3   :  { %v845_v50 = vpop.eup %844 }
 0x5b4   :  { %997 = shalt.err (!%p994_p12)
}
 0x5b5   :  { %s1094_s9 = smov 128   ;;  %s1095_s25 = smov 8   ;;  %v624_v52 = vmul.f32 %v845_v50, %v841_v43  ;;  %v623_v53 = vmul.f32 %v845_v50, %v839_v42  ;;  %v625_v55 = vmul.f32 %v587_v47, %v1255_v51  ;;  %v626_v57 = vmul.f32 %v587_v47, %v1260_v56 }
 0x5b6   :  { %692 = dma.vmem_to_hbm [thread:$0]  %s687_s23, 256, %s1334_s15, [#allocation20], %s1094_s9, %s1094_s9, %s1095_s25  }
 0x5b7   :  { %v640_v54 = vmul.f32 %v624_v52, %v1233_v30  ;;  %s1096_s21 = smov [#allocation16]   ;;  %s1097_s8 = smov [#allocation18]  }
 0x5b8   :  { %s664_s22 = sshll.u32 %s1096_s21, 4  ;;  %s677_s26 = sshll.u32 %s1097_s8, 4  ;;  %s665_s22 = int_to_ptr.vmem [resolvable:$true] %s664_s22  ;;  %s678_s26 = int_to_ptr.vmem [resolvable:$true] %s677_s26 }
 0x5b9   :  { %642 = vrot.lane.b32.xlu1 %v640_v54, %s1091_s6  ;;  %s1098_s15 = smov [#allocation15]   ;;  %s1006_s28 = scalar_lea.vmem %s665_s22, 256 }
 0x5ba   :  { %s655_s6 = sshll.u32 %s1098_s15, 4  ;;  %p1007_p13 = scmp.ne.s32.totalorder %s665_s22, %s1006_s28  ;;  %s656_s6 = int_to_ptr.vmem [resolvable:$true] %s655_s6 }
 0x5bb   :  { %p1011_p0 = scmp.lt.s32.totalorder %s665_s22, %s665_s22  ;;  %p1012_p1 = scmp.lt.s32.totalorder %s1006_s28, %s1006_s28 }
 0x5bd   :  { %p1013_p2 = por %p1012_p1, %p1011_p0 }
 0x5bf   :  { %p1014_p3 = pnand %p1013_p2, %p1007_p13 }
 0x624   :  { %v633_v58 = vpop.permute.xlu0 %632  ;;  %v635_v59 = vpop.permute.xlu1 %634 }
 0x625   :  { %v638_v60 = vadd.f32 %v633_v58, %v625_v55  ;;  %v639_v61 = vadd.f32 %v635_v59, %v626_v57 }
 0x627   :  { %646 = vst.msk [vmem:[#allocation16] sm:$0xff] %vm377_vm4, %v638_v60  ;;  %647 = vst.msk [vmem:[#allocation16 + $0x8] sm:$0xff] %vm377_vm4, %v639_v61 }
 0x628   :  { %1017 = shalt.err (!%p1014_p3)
}
 0x629   :  { %670 = dma.vmem_to_hbm [thread:$0]  %s665_s22, 256, %s1332_s13, [#allocation17], %s1094_s9, %s1094_s9, %s1095_s25   ;;  %v627_v51 = vmul.f32 %v623_v53, %v1233_v30 }
 0x62a   :  { %s1026_s0 = scalar_lea.vmem %s678_s26, 128  ;;  %p1031_p5 = scmp.lt.s32.totalorder %s678_s26, %s678_s26 }
 0x62b   :  { %p1027_p4 = scmp.ne.s32.totalorder %s678_s26, %s1026_s0  ;;  %p1032_p6 = scmp.lt.s32.totalorder %s1026_s0, %s1026_s0 }
 0x62d   :  { %p1033_p7 = por %p1032_p6, %p1031_p5 }
 0x62f   :  { %p1034_p8 = pnand %p1033_p7, %p1027_p4 }
 0x631   :  { %1037 = shalt.err (!%p1034_p8)
}
 0x632   :  { %680 = dma.vmem_to_hbm [thread:$0]  %s678_s26, 128, %s1333_s14, [#allocation17]   ;;  %v643_v56 = vpop.permute.xlu1 %642 }
 0x633   :  { %v645_v62 = vadd.f32 %v643_v56, %v627_v51  ;;  %s1046_s16 = scalar_lea.vmem %s656_s6, 128  ;;  %p1051_p10 = scmp.lt.s32.totalorder %s656_s6, %s656_s6 }
 0x634   :  { %p1047_p9 = scmp.ne.s32.totalorder %s656_s6, %s1046_s16  ;;  %p1052_p11 = scmp.lt.s32.totalorder %s1046_s16, %s1046_s16 }
 0x635   :  { %648 = vst.msk [vmem:[#allocation15] sm:$0xff] %vm377_vm4, %v645_v62 }
 0x636   :  { %p1053_p12 = por %p1052_p11, %p1051_p10 }
 0x638   :  { %p1054_p13 = pnand %p1053_p12, %p1047_p9 }
 0x63a   :  { %1057 = shalt.err (!%p1054_p13)
}
 0x63b   :  { %658 = dma.vmem_to_hbm [thread:$0]  %s656_s6, 128, %s1331_s12, [#allocation5]  }
 0x63c   :  { %1074 = dma.done.wait [#allocation5], 128  }
 0x63d   :  { %1075 = vsyncadd [#allocation5], 4294967168 }
 0x63e   :  { %1076 = dma.done.wait [#allocation17], 384  }
 0x63f   :  { %1077 = vsyncadd [#allocation17], 4294966912 }
 0x640   :  { %1078 = dma.done.wait [#allocation20], 256  }
 0x641   :  { %1079 = vsyncadd [#allocation20], 4294967040 }
 0x642   :  { %705 = vsyncpa [#allocation4], 1 }
 0x643   :  { %706 = vsyncpa [#allocation7], 1 }
 0x644   :  { %707 = vsyncpa [#allocation10], 1 }
 0x645   :  { %708 = vsyncpa [#allocation13], 1 }
 0x646   :  { %709 = vsyncpa [#allocation5], 1 }
 0x647   :  { %710 = vsyncpa [#allocation17], 1 }
 0x648   :  { %711 = vsyncpa [#allocation20], 1 }

</bundles_post_ra>
